<compile_context>
chip_gen: v7x
topology: tpu7x:2x2x1
jax: 0.10.0
libtpu: 0.0.40
codegen_flags: <defaults>
</compile_context>

<pallas_src>
import functools
import math

import jax
import jax.numpy as jnp
from jax import lax
from jax.experimental import pallas as pl
from jax.experimental.pallas import tpu as pltpu


# --------------------------------------------------------------------------- #
# Small helpers
# --------------------------------------------------------------------------- #
def _sublane_multiple(dtype):
    # 8 rows/sublane-tile for f32, 16 for bf16, 32 for int8/fp8.
    return max(8, 32 // jnp.dtype(dtype).itemsize)


def _round_up(v, m):
    return ((v + m - 1) // m) * m


def _reduction_identities(dtype):
    if jnp.issubdtype(dtype, jnp.floating):
        return -jnp.inf, jnp.inf
    info = jnp.iinfo(dtype)
    return info.min, info.max


def _vmem_capacity_bytes():
    try:
        return int(pltpu.get_tpu_info().vmem_capacity_bytes)
    except Exception:
        return 64 << 20  # v7x physical VMEM (smallest of v5e/v6e/v7x): conservative


def _block_budget(max_block_bytes):
    """Per-input-block byte budget + a vmem limit that leaves pipeline headroom."""
    cap = _vmem_capacity_bytes()
    # 2 input pipeline buffers + double-buffered outputs + compiler scratch must
    # stay well under physical VMEM (64 MiB on v7x, 128 MiB on v5e/v6e).
    budget = max(4096, min(max_block_bytes, cap // 6))
    vmem_limit = int(min(cap * 3 // 4, 96 << 20))
    return budget, vmem_limit


def _pick_tile(total, cap, multiple):
    """Largest divisor of `total` that is a multiple of `multiple` and <= cap.

    Falls back to the smallest valid divisor when no divisor fits `cap`
    (avoids silently ballooning to the full extent), and to `total` only when
    no divisor is a multiple of `multiple` at all (Pallas requires block dims
    to be a multiple of the tile or equal to the full dim).
    """
    cap = max(cap, multiple)
    if total <= cap:
        return total
    best = None
    smallest = None
    t = multiple
    while t < total:
        if total % t == 0:
            if smallest is None:
                smallest = t
            if t <= cap:
                best = t
            else:
                break
        t += multiple
    if best is not None:
        return best
    if smallest is not None:
        return smallest
    return total


def _ensure_parallel_extent(B, N, bt, it, sub):
    """Keep (B//bt)*(N//it) >= 2 when possible so both v7x TensorCores get work."""
    if (B // bt) * (N // it) >= 2:
        return bt, it
    if bt > 1:
        bt = _pick_tile(B, bt // 2, 1)
    elif it > sub:
        it2 = _pick_tile(N, it // 2, sub)
        if it2 < it:
            it = it2
    return bt, it


def _pick_tiles_merged(B, N, C, itemsize, sub, budget_bytes):
    """Tiles for the lane-dense (merged j,C) layout: block (Bt, It, Jt*C)."""
    lane_mult = 128 // math.gcd(C, 128)          # Jt multiple so Jt*C % 128 == 0
    tgt = max(sub * lane_mult * C * itemsize, budget_bytes)
    # Prefer large Jt (contiguous (b, i)-row DMA runs, good for v5e's HBM).
    jt = _pick_tile(N, max(lane_mult, tgt // (sub * C * itemsize)), lane_mult)
    it = _pick_tile(N, max(sub, tgt // (jt * C * itemsize)), sub)
    bt = _pick_tile(B, max(1, tgt // (it * jt * C * itemsize)), 1)
    bt, it = _ensure_parallel_extent(B, N, bt, it, sub)
    return bt, it, jt


def _pick_tiles_4d(B, N, C, itemsize, sub, budget_bytes):
    """Tiles for the wide-channel (C >= 128) layout: block (Bt, It, Jt, C)."""
    c_pad = _round_up(C, 128)                    # padded lane bytes, not nominal
    tgt = max(sub * sub * c_pad * itemsize, budget_bytes)
    jt = _pick_tile(N, max(sub, tgt // (sub * c_pad * itemsize)), sub)
    jt_pad = _round_up(jt, sub)
    it = _pick_tile(N, max(sub, tgt // (jt_pad * c_pad * itemsize)), sub)
    bt = _pick_tile(B, max(1, tgt // (it * jt_pad * c_pad * itemsize)), 1)
    bt, it = _ensure_parallel_extent(B, N, bt, it, sub)
    return bt, it, jt


# --------------------------------------------------------------------------- #
# Kernels
# --------------------------------------------------------------------------- #
def _lane_group_reduce(v, op, jt, c):
    """Reduce `jt` groups of `c` lanes each (merged lane axis) with a cyclic
    doubling roll tree.  max/min are idempotent, so the wrap-around of the
    cyclic roll is harmless even when jt is not a power of two."""
    cov = 1
    while cov < jt:
        v = op(v, pltpu.roll(v, shift=cov * c, axis=v.ndim - 1))
        cov *= 2
    return v[..., :c]


def _reducer_kernel_merged(x_ref, *out_refs, exclude_self, exists, It, Jt, C):
    """Lane-dense kernel: x block is (Bt, It, Jt*C)."""
    ii = pl.program_id(1)
    kj = pl.program_id(2)
    x = x_ref[...]
    dtype = x.dtype

    if exists:
        ex_ref, fa_ref = out_refs
    else:
        (ex_ref,) = out_refs

    lo, hi = _reduction_identities(dtype)

    @pl.when(kj == 0)
    def _init():
        ex_ref[...] = jnp.full(ex_ref.shape, lo, dtype)
        if exists:
            fa_ref[...] = jnp.full(fa_ref.shape, hi, dtype)

    def _accumulate(inp0, inp1):
        ex_ref[...] = jnp.maximum(
            ex_ref[...], _lane_group_reduce(inp0, jnp.maximum, Jt, C))
        if exists:
            fa_ref[...] = jnp.minimum(
                fa_ref[...], _lane_group_reduce(inp1, jnp.minimum, Jt, C))

    if exclude_self:
        # Does this (i-tile, j-tile) touch the i == j diagonal at all?
        on_diag = jnp.logical_and(ii * It <= kj * Jt + (Jt - 1),
                                  kj * Jt <= ii * It + (It - 1))

        @pl.when(on_diag)
        def _with_diag():
            lane = lax.broadcasted_iota(jnp.int32, (1, It, Jt * C), 2)
            row = lax.broadcasted_iota(jnp.int32, (1, It, Jt * C), 1)
            # Local j index (within this tile) of each row's diagonal element.
            d = (ii * It + row) - kj * Jt
            lo_lane = d * C
            diag = jnp.logical_and(lane >= lo_lane, lane < lo_lane + C)
            inp0 = jnp.where(diag, jnp.zeros((), dtype), x)       # diag -> 0
            inp1 = inp0 + diag.astype(dtype) if exists else inp0  # diag -> 1
            _accumulate(inp0, inp1)

        @pl.when(jnp.logical_not(on_diag))
        def _without_diag():
            _accumulate(x, x)
    else:
        _accumulate(x, x)


def _reducer_kernel_4d(x_ref, *out_refs, exclude_self, exists, It, Jt):
    """Wide-channel kernel (C >= 128): x block is (Bt, It, Jt, C)."""
    ii = pl.program_id(1)
    kj = pl.program_id(2)
    x = x_ref[...]
    dtype = x.dtype

    if exists:
        ex_ref, fa_ref = out_refs
    else:
        (ex_ref,) = out_refs

    lo, hi = _reduction_identities(dtype)

    @pl.when(kj == 0)
    def _init():
        ex_ref[...] = jnp.full(ex_ref.shape, lo, dtype)
        if exists:
            fa_ref[...] = jnp.full(fa_ref.shape, hi, dtype)

    def _accumulate(inp0, inp1):
        ex_ref[...] = jnp.maximum(ex_ref[...], jnp.max(inp0, axis=2))
        if exists:
            fa_ref[...] = jnp.minimum(fa_ref[...], jnp.min(inp1, axis=2))

    if exclude_self:
        on_diag = jnp.logical_and(ii * It <= kj * Jt + (Jt - 1),
                                  kj * Jt <= ii * It + (It - 1))

        @pl.when(on_diag)
        def _with_diag():
            i_idx = ii * It + lax.broadcasted_iota(jnp.int32, (1, It, Jt, 1), 1)
            j_idx = kj * Jt + lax.broadcasted_iota(jnp.int32, (1, It, Jt, 1), 2)
            diag = i_idx == j_idx
            inp0 = jnp.where(diag, jnp.zeros((), dtype), x)
            inp1 = inp0 + diag.astype(dtype) if exists else inp0
            _accumulate(inp0, inp1)

        @pl.when(jnp.logical_not(on_diag))
        def _without_diag():
            _accumulate(x, x)
    else:
        _accumulate(x, x)


# --------------------------------------------------------------------------- #
# Wrapper
# --------------------------------------------------------------------------- #
def reducer_pallas(x, *, exclude_self=True, exists=True, max_block_bytes=4 << 20):
    """Pallas equivalent of Reducer(dim=2, exclude_self, exists).forward(x)."""
    assert x.ndim == 4 and x.shape[1] == x.shape[2], "expected (B, N, N, C)"
    B, N, _, C = x.shape
    dtype = x.dtype
    itemsize = jnp.dtype(dtype).itemsize
    sub = _sublane_multiple(dtype)
    budget, vmem_limit = _block_budget(max_block_bytes)

    use_merged = C < 128  # lane-densify (j, C) when C alone under-fills 128 lanes

    if use_merged:
        Bt, It, Jt = _pick_tiles_merged(B, N, C, itemsize, sub, budget)
        x_in = x.reshape(B, N, N * C)  # free: contiguous row-major
        in_specs = [pl.BlockSpec((Bt, It, Jt * C), lambda bi, ii, kj: (bi, ii, kj))]
        kernel = functools.partial(_reducer_kernel_merged,
                                   exclude_self=exclude_self, exists=exists,
                                   It=It, Jt=Jt, C=C)
    else:
        Bt, It, Jt = _pick_tiles_4d(B, N, C, itemsize, sub, budget)
        x_in = x
        in_specs = [pl.BlockSpec((Bt, It, Jt, C), lambda bi, ii, kj: (bi, ii, kj, 0))]
        kernel = functools.partial(_reducer_kernel_4d,
                                   exclude_self=exclude_self, exists=exists,
                                   It=It, Jt=Jt)

    grid = (B // Bt, N // It, N // Jt)

    def _out_block():
        return pl.BlockSpec((Bt, It, C), lambda bi, ii, kj: (bi, ii, 0))

    out_struct = jax.ShapeDtypeStruct((B, N, C), dtype)
    if exists:
        out_shape = (out_struct, out_struct)
        out_specs = (_out_block(), _out_block())
    else:
        out_shape = out_struct
        out_specs = _out_block()

    n_out = 2 if exists else 1
    cost = pl.CostEstimate(
        flops=n_out * B * N * N * C,
        transcendentals=0,
        bytes_accessed=B * N * N * C * itemsize + n_out * B * N * C * itemsize)

    outs = pl.pallas_call(
        kernel,
        out_shape=out_shape,
        grid=grid,
        in_specs=in_specs,
        out_specs=out_specs,
        compiler_params=pltpu.CompilerParams(
            # batch / i tiles independent (megacore-shardable); reduced j axis
            # sequential with resident output accumulators.
            dimension_semantics=("parallel", "parallel", "arbitrary"),
            vmem_limit_bytes=vmem_limit,
        ),
        cost_estimate=cost,
    )(x_in)

    if exists:
        ex, fa = outs
        # Channel interleave: out[..., 2c] = exists[..., c], out[..., 2c+1] = forall[..., c]
        return jnp.stack((ex, fa), axis=-1).reshape(B, N, 2 * C)
    return outs


# --------------------------------------------------------------------------- #
# Pure-JAX reference (matches the PyTorch Reducer for dim=2)
# --------------------------------------------------------------------------- #
def reducer_reference(x, *, exclude_self=True, exists=True):
    B, N, _, C = x.shape
    if exclude_self:
        i = jnp.arange(N)[:, None]
        j = jnp.arange(N)[None, :]
        mask = (i != j)[None, :, :, None]
        inp0 = jnp.where(mask, x, jnp.zeros((), x.dtype))
        inp1 = jnp.where(mask, x, jnp.ones((), x.dtype))
    else:
        inp0, inp1 = x, x
    ex = jnp.max(inp0, axis=-2)
    if exists:
        fa = jnp.min(inp1, axis=-2)
        return jnp.stack((ex, fa), axis=-1).reshape(B, N, 2 * C)
    return ex


if __name__ == "__main__":
    key = jax.random.PRNGKey(0)

    # 1) Typical NLM binary-predicate shape (lane-dense merged path, C < 128).
    B, N, C = 2, 8, 32
    x = jax.random.uniform(key, (B, N, N, C), dtype=jnp.float32)
    out = jax.block_until_ready(reducer_pallas(x, exclude_self=True, exists=True))
    ref = reducer_reference(x, exclude_self=True, exists=True)
    assert out.shape == (B, N, 2 * C), out.shape
    assert jnp.allclose(out, ref, atol=1e-6), "mismatch vs reference (merged path)"

    # 2) Forced small blocks: exercises multi-step j accumulation + the
    #    pl.when diagonal gating on both diagonal and off-diagonal tiles.
    x2 = jax.random.uniform(jax.random.PRNGKey(1), (2, 32, 32, 32), jnp.float32)
    out2 = jax.block_until_ready(reducer_pallas(x2, max_block_bytes=8 * 1024))
    assert jnp.allclose(out2, reducer_reference(x2), atol=1e-6), \
        "mismatch vs reference (tiled merged path)"

    # 3) Wide-channel shape (C >= 128 keeps the 4-D layout).
    x3 = jax.random.uniform(jax.random.PRNGKey(2), (2, 8, 8, 128), jnp.float32)
    out3 = jax.block_until_ready(reducer_pallas(x3))
    assert jnp.allclose(out3, reducer_reference(x3), atol=1e-6), \
        "mismatch vs reference (4-D path)"

    # 4) exists=False variant (single max output).
    out4 = jax.block_until_ready(reducer_pallas(x, exists=False))
    assert jnp.allclose(out4, reducer_reference(x, exists=False), atol=1e-6), \
        "mismatch vs reference (exists=False)"

    print("KERNEL_OK")
</pallas_src>

<mosaic_0001>
module attributes {stable_mosaic.version = 11 : i64} {
  func.func @_reducer_kernel_merged(%arg0: i32, %arg1: i32, %arg2: i32, %arg3: memref<1x8x256xf32, #tpu.memory_space<vmem>>, %arg4: memref<1x8x32xf32, #tpu.memory_space<vmem>>, %arg5: memref<1x8x32xf32, #tpu.memory_space<vmem>>) attributes {dimension_semantics = [#tpu.dimension_semantics<parallel>, #tpu.dimension_semantics<parallel>, #tpu.dimension_semantics<arbitrary>], iteration_bounds = array<i64: 2, 1, 1>, scalar_prefetch = 0 : i64, scratch_operands = 0 : i64, tpu.core_type = #tpu.core_type<tc>, window_params = [{transform_indices = @transform_0, window_bounds = array<i64: 1, 8, 256>}, {transform_indices = @transform_1, window_bounds = array<i64: 1, 8, 32>}, {transform_indices = @transform_2, window_bounds = array<i64: 1, 8, 32>}]} {
    %c0 = arith.constant 0 : index
    %c0_0 = arith.constant 0 : index
    %c0_1 = arith.constant 0 : index
    %0 = vector.load %arg3[%c0, %c0_0, %c0_1] : memref<1x8x256xf32, #tpu.memory_space<vmem>>, vector<1x8x256xf32>
    %c0_i32 = arith.constant 0 : i32
    %1 = arith.cmpi eq, %arg2, %c0_i32 : i32
    %2 = arith.extui %1 : i1 to i32
    %c0_i32_2 = arith.constant 0 : i32
    %3 = arith.cmpi ne, %2, %c0_i32_2 : i32
    scf.if %3 {
      %cst = arith.constant 0xFF800000 : f32
      %18 = vector.broadcast %cst : f32 to vector<1x8x32xf32>
      %c0_9 = arith.constant 0 : index
      %c0_10 = arith.constant 0 : index
      %c0_11 = arith.constant 0 : index
      %19 = vector.load %arg4[%c0_9, %c0_10, %c0_11] : memref<1x8x32xf32, #tpu.memory_space<vmem>>, vector<1x8x32xf32>
      tpu.vector_store %arg4[%c0_9, %c0_10, %c0_11], %18 {strides = array<i32>} : memref<1x8x32xf32, #tpu.memory_space<vmem>>, vector<1x8x32xf32>,
      %cst_12 = arith.constant 0x7F800000 : f32
      %20 = vector.broadcast %cst_12 : f32 to vector<1x8x32xf32>
      %c0_13 = arith.constant 0 : index
      %c0_14 = arith.constant 0 : index
      %c0_15 = arith.constant 0 : index
      %21 = vector.load %arg5[%c0_13, %c0_14, %c0_15] : memref<1x8x32xf32, #tpu.memory_space<vmem>>, vector<1x8x32xf32>
      tpu.vector_store %arg5[%c0_13, %c0_14, %c0_15], %20 {strides = array<i32>} : memref<1x8x32xf32, #tpu.memory_space<vmem>>, vector<1x8x32xf32>,
    } else {
    }
    %c8_i32 = arith.constant 8 : i32
    %4 = arith.muli %arg1, %c8_i32 : i32
    %c8_i32_3 = arith.constant 8 : i32
    %5 = arith.muli %arg2, %c8_i32_3 : i32
    %c7_i32 = arith.constant 7 : i32
    %6 = arith.addi %5, %c7_i32 : i32
    %7 = arith.cmpi sle, %4, %6 : i32
    %c8_i32_4 = arith.constant 8 : i32
    %8 = arith.muli %arg2, %c8_i32_4 : i32
    %c8_i32_5 = arith.constant 8 : i32
    %9 = arith.muli %arg1, %c8_i32_5 : i32
    %c7_i32_6 = arith.constant 7 : i32
    %10 = arith.addi %9, %c7_i32_6 : i32
    %11 = arith.cmpi sle, %8, %10 : i32
    %12 = arith.andi %7, %11 : i1
    %13 = arith.extui %12 : i1 to i32
    %c0_i32_7 = arith.constant 0 : i32
    %14 = arith.cmpi ne, %13, %c0_i32_7 : i32
    scf.if %14 {
      %18 = tpu.iota {dimensions = array<i32: 2>} : vector<1x8x256xi32>
      %19 = tpu.iota {dimensions = array<i32: 1>} : vector<1x8x256xi32>
      %c8_i32_9 = arith.constant 8 : i32
      %20 = arith.muli %arg1, %c8_i32_9 : i32
      %21 = vector.broadcast %20 : i32 to vector<1x8x256xi32>
      %22 = arith.addi %21, %19 : vector<1x8x256xi32>
      %c8_i32_10 = arith.constant 8 : i32
      %23 = arith.muli %arg2, %c8_i32_10 : i32
      %24 = vector.broadcast %23 : i32 to vector<1x8x256xi32>
      %25 = arith.subi %22, %24 : vector<1x8x256xi32>
      %c32_i32 = arith.constant 32 : i32
      %26 = vector.broadcast %c32_i32 : i32 to vector<1x8x256xi32>
      %27 = arith.muli %25, %26 : vector<1x8x256xi32>
      %28 = arith.cmpi sge, %18, %27 : vector<1x8x256xi32>
      %c32_i32_11 = arith.constant 32 : i32
      %29 = vector.broadcast %c32_i32_11 : i32 to vector<1x8x256xi32>
      %30 = arith.addi %27, %29 : vector<1x8x256xi32>
      %31 = arith.cmpi slt, %18, %30 : vector<1x8x256xi32>
      %32 = arith.andi %28, %31 : vector<1x8x256xi1>
      %cst = arith.constant 0.000000e+00 : f32
      %33 = vector.broadcast %cst : f32 to vector<1x8x256xf32>
      %34 = arith.select %32, %33, %0 : vector<1x8x256xi1>, vector<1x8x256xf32>
      %35 = arith.extui %32 : vector<1x8x256xi1> to vector<1x8x256xi32>
      %36 = arith.sitofp %35 : vector<1x8x256xi32> to vector<1x8x256xf32>
      %37 = arith.addf %34, %36 : vector<1x8x256xf32>
      %c0_12 = arith.constant 0 : index
      %c0_13 = arith.constant 0 : index
      %c0_14 = arith.constant 0 : index
      %38 = vector.load %arg4[%c0_12, %c0_13, %c0_14] : memref<1x8x32xf32, #tpu.memory_space<vmem>>, vector<1x8x32xf32>
      %c32_i32_15 = arith.constant 32 : i32
      %39 = tpu.dynamic_rotate %34 by %c32_i32_15 dim 2 : vector<1x8x256xf32>, i32 -> vector<1x8x256xf32>
      %40 = arith.maximumf %34, %39 : vector<1x8x256xf32>
      %c64_i32 = arith.constant 64 : i32
      %41 = tpu.dynamic_rotate %40 by %c64_i32 dim 2 : vector<1x8x256xf32>, i32 -> vector<1x8x256xf32>
      %42 = arith.maximumf %40, %41 : vector<1x8x256xf32>
      %c128_i32 = arith.constant 128 : i32
      %43 = tpu.dynamic_rotate %42 by %c128_i32 dim 2 : vector<1x8x256xf32>, i32 -> vector<1x8x256xf32>
      %44 = arith.maximumf %42, %43 : vector<1x8x256xf32>
      %45 = vector.extract_strided_slice %44 {offsets = [0, 0, 0], sizes = [1, 8, 32], strides = [1, 1, 1]} : vector<1x8x256xf32> to vector<1x8x32xf32>
      %46 = arith.maximumf %38, %45 : vector<1x8x32xf32>
      %c0_16 = arith.constant 0 : index
      %c0_17 = arith.constant 0 : index
      %c0_18 = arith.constant 0 : index
      %47 = vector.load %arg4[%c0_16, %c0_17, %c0_18] : memref<1x8x32xf32, #tpu.memory_space<vmem>>, vector<1x8x32xf32>
      tpu.vector_store %arg4[%c0_16, %c0_17, %c0_18], %46 {strides = array<i32>} : memref<1x8x32xf32, #tpu.memory_space<vmem>>, vector<1x8x32xf32>,
      %c0_19 = arith.constant 0 : index
      %c0_20 = arith.constant 0 : index
      %c0_21 = arith.constant 0 : index
      %48 = vector.load %arg5[%c0_19, %c0_20, %c0_21] : memref<1x8x32xf32, #tpu.memory_space<vmem>>, vector<1x8x32xf32>
      %c32_i32_22 = arith.constant 32 : i32
      %49 = tpu.dynamic_rotate %37 by %c32_i32_22 dim 2 : vector<1x8x256xf32>, i32 -> vector<1x8x256xf32>
      %50 = arith.minimumf %37, %49 : vector<1x8x256xf32>
      %c64_i32_23 = arith.constant 64 : i32
      %51 = tpu.dynamic_rotate %50 by %c64_i32_23 dim 2 : vector<1x8x256xf32>, i32 -> vector<1x8x256xf32>
      %52 = arith.minimumf %50, %51 : vector<1x8x256xf32>
      %c128_i32_24 = arith.constant 128 : i32
      %53 = tpu.dynamic_rotate %52 by %c128_i32_24 dim 2 : vector<1x8x256xf32>, i32 -> vector<1x8x256xf32>
      %54 = arith.minimumf %52, %53 : vector<1x8x256xf32>
      %55 = vector.extract_strided_slice %54 {offsets = [0, 0, 0], sizes = [1, 8, 32], strides = [1, 1, 1]} : vector<1x8x256xf32> to vector<1x8x32xf32>
      %56 = arith.minimumf %48, %55 : vector<1x8x32xf32>
      %c0_25 = arith.constant 0 : index
      %c0_26 = arith.constant 0 : index
      %c0_27 = arith.constant 0 : index
      %57 = vector.load %arg5[%c0_25, %c0_26, %c0_27] : memref<1x8x32xf32, #tpu.memory_space<vmem>>, vector<1x8x32xf32>
      tpu.vector_store %arg5[%c0_25, %c0_26, %c0_27], %56 {strides = array<i32>} : memref<1x8x32xf32, #tpu.memory_space<vmem>>, vector<1x8x32xf32>,
    } else {
    }
    %true = arith.constant true
    %15 = arith.xori %12, %true : i1
    %16 = arith.extui %15 : i1 to i32
    %c0_i32_8 = arith.constant 0 : i32
    %17 = arith.cmpi ne, %16, %c0_i32_8 : i32
    scf.if %17 {
      %c0_9 = arith.constant 0 : index
      %c0_10 = arith.constant 0 : index
      %c0_11 = arith.constant 0 : index
      %18 = vector.load %arg4[%c0_9, %c0_10, %c0_11] : memref<1x8x32xf32, #tpu.memory_space<vmem>>, vector<1x8x32xf32>
      %c32_i32 = arith.constant 32 : i32
      %19 = tpu.dynamic_rotate %0 by %c32_i32 dim 2 : vector<1x8x256xf32>, i32 -> vector<1x8x256xf32>
      %20 = arith.maximumf %0, %19 : vector<1x8x256xf32>
      %c64_i32 = arith.constant 64 : i32
      %21 = tpu.dynamic_rotate %20 by %c64_i32 dim 2 : vector<1x8x256xf32>, i32 -> vector<1x8x256xf32>
      %22 = arith.maximumf %20, %21 : vector<1x8x256xf32>
      %c128_i32 = arith.constant 128 : i32
      %23 = tpu.dynamic_rotate %22 by %c128_i32 dim 2 : vector<1x8x256xf32>, i32 -> vector<1x8x256xf32>
      %24 = arith.maximumf %22, %23 : vector<1x8x256xf32>
      %25 = vector.extract_strided_slice %24 {offsets = [0, 0, 0], sizes = [1, 8, 32], strides = [1, 1, 1]} : vector<1x8x256xf32> to vector<1x8x32xf32>
      %26 = arith.maximumf %18, %25 : vector<1x8x32xf32>
      %c0_12 = arith.constant 0 : index
      %c0_13 = arith.constant 0 : index
      %c0_14 = arith.constant 0 : index
      %27 = vector.load %arg4[%c0_12, %c0_13, %c0_14] : memref<1x8x32xf32, #tpu.memory_space<vmem>>, vector<1x8x32xf32>
      tpu.vector_store %arg4[%c0_12, %c0_13, %c0_14], %26 {strides = array<i32>} : memref<1x8x32xf32, #tpu.memory_space<vmem>>, vector<1x8x32xf32>,
      %c0_15 = arith.constant 0 : index
      %c0_16 = arith.constant 0 : index
      %c0_17 = arith.constant 0 : index
      %28 = vector.load %arg5[%c0_15, %c0_16, %c0_17] : memref<1x8x32xf32, #tpu.memory_space<vmem>>, vector<1x8x32xf32>
      %c32_i32_18 = arith.constant 32 : i32
      %29 = tpu.dynamic_rotate %0 by %c32_i32_18 dim 2 : vector<1x8x256xf32>, i32 -> vector<1x8x256xf32>
      %30 = arith.minimumf %0, %29 : vector<1x8x256xf32>
      %c64_i32_19 = arith.constant 64 : i32
      %31 = tpu.dynamic_rotate %30 by %c64_i32_19 dim 2 : vector<1x8x256xf32>, i32 -> vector<1x8x256xf32>
      %32 = arith.minimumf %30, %31 : vector<1x8x256xf32>
      %c128_i32_20 = arith.constant 128 : i32
      %33 = tpu.dynamic_rotate %32 by %c128_i32_20 dim 2 : vector<1x8x256xf32>, i32 -> vector<1x8x256xf32>
      %34 = arith.minimumf %32, %33 : vector<1x8x256xf32>
      %35 = vector.extract_strided_slice %34 {offsets = [0, 0, 0], sizes = [1, 8, 32], strides = [1, 1, 1]} : vector<1x8x256xf32> to vector<1x8x32xf32>
      %36 = arith.minimumf %28, %35 : vector<1x8x32xf32>
      %c0_21 = arith.constant 0 : index
      %c0_22 = arith.constant 0 : index
      %c0_23 = arith.constant 0 : index
      %37 = vector.load %arg5[%c0_21, %c0_22, %c0_23] : memref<1x8x32xf32, #tpu.memory_space<vmem>>, vector<1x8x32xf32>
      tpu.vector_store %arg5[%c0_21, %c0_22, %c0_23], %36 {strides = array<i32>} : memref<1x8x32xf32, #tpu.memory_space<vmem>>, vector<1x8x32xf32>,
    } else {
    }
    return
  }
  func.func @transform_0(%arg0: i32, %arg1: i32, %arg2: i32) -> (i32, i32, i32) {
    %c0_i32 = arith.constant 0 : i32
    return %arg0, %arg1, %arg2 : i32, i32, i32
  }
  func.func @transform_1(%arg0: i32, %arg1: i32, %arg2: i32) -> (i32, i32, i32) {
    %c0_i32 = arith.constant 0 : i32
    %c0_i32_0 = arith.constant 0 : i32
    return %arg0, %arg1, %c0_i32 : i32, i32, i32
  }
  func.func @transform_2(%arg0: i32, %arg1: i32, %arg2: i32) -> (i32, i32, i32) {
    %c0_i32 = arith.constant 0 : i32
    %c0_i32_0 = arith.constant 0 : i32
    return %arg0, %arg1, %c0_i32 : i32, i32, i32
  }
}

</mosaic_0001>

<bundles_post_ra>
// kernel: tpu_custom_call.1
= control target key start
LH: loop header
LB: loop body
LE: loop exit
PB: predicated region body
PF: predicated region fallthrough
CT: control target
= control target key end

     0   :  { %8 = vsyncpa [#allocation3], 0  ;;  %s978_s0 = inlined_call_operand.hbm [shape: f32[2,8,256], index: 0, kind: input, shape index: {}]   ;;  %s979_s1 = inlined_call_operand.hbm [shape: f32[2,8,32], index: 1, kind: output, shape index: {0}]   ;;  %s980_s2 = inlined_call_operand.hbm [shape: f32[2,8,32], index: 2, kind: output, shape index: {1}]  }
   0x1   :  { %10 = vsyncpa [#allocation3 + $0x1], 0 }
   0x2   :  { %11 = vsyncpa [#allocation4], 0 }
   0x3   :  { %13 = vsyncpa [#allocation4 + $0x1], 0 }
   0x4   :  { %14 = vsyncpa [#allocation7], 0 }
   0x5   :  { %16 = vsyncpa [#allocation7 + $0x1], 0  ;;  %s747_s9 = smov 0   ;;  %s749_s10 = smov 0  }
   0x6   :  { %s751_s11 = smov 0   ;;  %s753_s12 = smov 0  }
   0x7   :  { %s755_s13 = smov 0   ;;  %s757_s14 = smov 0  }
   0x8 LB: > { %s486_s15 = sadd.s32 4294967295, %s722_s14   ;;  %s487_s16 = sadd.s32 4294967294, %s722_s14   ;;  %s722_s14 = sphi %s757_s14, %s22_s14   ;;  %s718_s13 = sphi %s755_s13, %s996_s13   ;;  %s714_s12 = sphi %s753_s12, %s995_s12   ;;  %s710_s11 = sphi %s751_s11, %s994_s11   ;;  %s706_s10 = sphi %s749_s10, %s993_s10   ;;  %s702_s9 = sphi %s747_s9, %s992_s9  }
   0x9   : > { %s41_s17 = sadd.s32 1, %s718_s13  ;;  %s52_s18 = sadd.s32 1, %s710_s11 }
   0xa   : > { %p43_p0 = scmp.ge.s32.totalorder %s41_s17, 2  ;;  %p59_p1 = scmp.ne.s32.totalorder %s710_s11, %s706_s10 }
   0xb   : > { %p60_p2 = scmp.eq.s32.totalorder %s722_s14, 0  ;;  %p65_p3 = scmp.ne.s32.totalorder %s706_s10, %s702_s9 }
   0xc   : > { %s998_s17 = smov (%p43_p0, %s41_s17), 0  ;;  %p66_p5 = scmp.eq.s32.totalorder %s486_s15, 0 }
   0xd   : > { %p788_p4 = por %p60_p2, %p59_p1  ;;  %s45_s20 = ssub.s32 %s718_s13, %s998_s17 }
   0xe   : > { %p91_p6 = scmp.eq.s32.totalorder %s486_s15, 1  ;;  %p50_p7 = scmp.eq.s32.totalorder %s45_s20, 0 }
   0xf   : > { %p794_p8 = por %p66_p5, %p65_p3  ;;  %p97_p10 = scmp.eq.s32.totalorder %s487_s16, 1 }
  0x10   : > { %p798_p9 = por %p91_p6, %p59_p1  ;;  %p523_p13 = scmp.lt.s32.totalorder %s722_s14, 2 }
  0x11   : > { %s803_s23 = scalar_select %p50_p7, %s710_s11, %s52_s18  }
  0x12   : > { %s984_s22 = scalar_select %p798_p9, 1, 0 }
  0x13   : > { %p805_p11 = por %p97_p10, %p65_p3  ;;  %s145_s25 = sand.u32 1, %s710_s11  }
  0x14   : > { %s490_s26 = sshll.u32 %s145_s25, 4  ;;  %s505_s27 = sshll.u32 %s718_s13, 8 }
  0x15   : > { %s985_s24 = scalar_select %p805_p11, 1, 0 }
  0x16   : > { %s816_s30 = scalar_lea.hbm %s978_s0, %s505_s27  ;;  %s149_s3 = scalar_lea.vmem [#allocation2], %s490_s26 }
  0x17   : > { %s161_s4 = sshll.u32 %s149_s3, 4  ;;  %p822_p0 = pnand %p523_p13, %p788_p4  ;;  %s818_s4 = int_to_ptr.vmem [resolvable:$true] %s161_s4 }
  0x18   : > { %s146_s6 = scalar_lea.sflag [#allocation3], %s145_s25  ;;  %s578_s7 = scalar_lea.hbm %s816_s30, 256 }
  0x19   : > { %p579_p3 = scmp.ne.s32.totalorder %s816_s30, %s578_s7  ;;  %p580_p5 = pneg %p822_p0 }
  0x1a   : > { %s583_s16 = scalar_lea.hbm %s978_s0, 512  ;;  %p584_p4 = scmp.lt.u32.totalorder %s816_s30, %s978_s0 }
  0x1b   : > { %p581_p6 = pnand %p580_p5, %p579_p3  ;;  %p585_p10 = scmp.lt.u32.totalorder %s583_s16, %s578_s7 }
  0x1c   : > { %p587_p12 = scmp.lt.u32.totalorder %s578_s7, %s816_s30 }
  0x1d   : > { %p582_p7 = pneg %p581_p6  ;;  %p586_p13 = por %p585_p10, %p584_p4 }
  0x1f   : > { %p588_p1 = por %p587_p12, %p586_p13 }
  0x21   : > { %p589_p2 = pnand %p588_p1, %p582_p7 }
  0x23   : > { %592 = shalt.err (!%p589_p2)
}
  0x24   : > { %s593_s20 = scalar_lea.vmem %s818_s4, 256  ;;  %s724_s25 = smov [#allocation2]  }
  0x25   : > { %p594_p3 = scmp.ne.s32.totalorder %s818_s4, %s593_s20  ;;  %s598_s26 = sshll.u32 %s724_s25, 4  ;;  %s599_s26 = int_to_ptr.vmem [resolvable:$false] %s598_s26 }
  0x26   : > { %s600_s27 = scalar_lea.vmem %s599_s26, 512  ;;  %p601_p9 = scmp.lt.s32.totalorder %s818_s4, %s599_s26 }
  0x27   : > { %p596_p6 = pnand %p594_p3, %p580_p5  ;;  %p602_p4 = scmp.lt.s32.totalorder %s600_s27, %s593_s20 }
  0x29   : > { %p597_p11 = pneg %p596_p6  ;;  %p603_p10 = por %p602_p4, %p601_p9 }
  0x2b   : > { %p604_p12 = pnand %p603_p10, %p597_p11 }
  0x2d   : > { %607 = shalt.err (!%p604_p12)
}
  0x2e   : > { %515 = dma.hbm_to_vmem [thread:$0]  (!%p822_p0), %s816_s30, 256, %s818_s4, %s146_s6  }
  0x2f   : > { %p987_p1 = scmp.lt.s32.totalorder %s722_s14, 3  ;;  %p988_p2 = scmp.ge.s32.totalorder %s722_s14, 1 }
  0x31   : > { %p167_p5 = pnand %p988_p2, %p987_p1 }
  0x32   : > { %s858_s28 = sand.u32 (!%p167_p5), 1, %s706_s10  }
  0x33   : > { %170 = sbr.rel (%p167_p5) target bundleno = 351 (0x15f), region = 24  ;;  %s494_s29 = sshll.u32 (!%p167_p5), %s858_s28, 4 }
  0x34   : > { %s173_s3 = scalar_lea.sflag (!%p167_p5), [#allocation3], %s858_s28  ;;  %s176_s7 = scalar_lea.vmem (!%p167_p5), [#allocation2], %s494_s29 }
  0x3a   : > { %689 = dma.done.wait (%p794_p8), %s173_s3, 256  }
  0x3b   : > { %691 = vsyncadd (%p794_p8), %s173_s3, 4294967040  ;;  %v222_v0 = vlaneseq  ;;  %v203_v6 = vld [vmem:[%s176_s7] sm:$0xff]  ;;  %v204_v7 = vld [vmem:[%s176_s7 + $0x8] sm:$0xff]  ;;  %v725_v9 = vmov 0.0   ;;  %s726_s21 = smov 32   ;;  %s495_s30 = sshll.u32 %s858_s28, 3 }
  0x3c   : > { %vm209_vm6 = vcmask 261120   ;;  %s872_s4 = scalar_lea.vmem [#allocation5], %s495_s30  ;;  %v727_v15 = vmov -inf   ;;  %s876_s5 = scalar_lea.vmem [#allocation6], %s495_s30  ;;  %v728_v16 = vmov inf  }
  0x3d   : > { %v866_v1 = vand.u32 127, %v222_v0  ;;  %v226_v2 = vshrl.u32 %v222_v0, 7  ;;  %210 = vst.msk [vmem:[%s872_s4] sm:$0xff] %vm209_vm6, %v727_v15  ;;  %211 = vst.msk [vmem:[%s876_s5] sm:$0xff] %vm209_vm6, %v728_v16  ;;  %s729_s6 = smov 64   ;;  %s501_s8 = sshll.u32 %s714_s12, 7 }
  0x3e   : > { %s352_s15 = sshll.u32 %s872_s4, 4  ;;  %s890_s19 = scalar_lea.hbm %s979_s1, %s501_s8  ;;  %s892_s15 = int_to_ptr.vmem [resolvable:$true] %s352_s15 }
  0x3f   : > { %v231_v3 = vmul.u32 32, %v226_v2  ;;  %v224_v4 = vadd.s32 128, %v866_v1  ;;  %vm252_vm7 = vcmp.lt.s32.totalorder %v866_v1, 32  ;;  %vm261_vm8 = vcmp.lt.s32.totalorder %v866_v1, 64  ;;  %s366_s20 = sshll.u32 %s876_s5, 4  ;;  %s333_s25 = scalar_lea.sflag [#allocation4], %s858_s28  ;;  %s929_s20 = int_to_ptr.vmem [resolvable:$true] %s366_s20 }
  0x40   : > { %s608_s26 = scalar_lea.vmem %s892_s15, 128  ;;  %p989_p9 = scmp.ne.s32.totalorder %s984_s22, 0 }
  0x41   : > { %vm232_vm0 = vcmp.ge.s32.totalorder %v866_v1, %v231_v3  ;;  %v234_v5 = vadd.s32 32, %v231_v3  ;;  %vm233_vm1 = vcmp.ge.s32.totalorder %v224_v4, %v231_v3  ;;  %p609_p8 = scmp.ne.s32.totalorder %s892_s15, %s608_s26  ;;  %s730_s27 = smov [#allocation5]  }
  0x42   : > { %s612_s29 = sshll.u32 %s730_s27, 4  ;;  %s613_s29 = int_to_ptr.vmem [resolvable:$false] %s612_s29 }
  0x43   : > { %vm235_vm2 = vcmp.lt.s32.totalorder %v866_v1, %v234_v5  ;;  %vm236_vm3 = vcmp.lt.s32.totalorder %v224_v4, %v234_v5  ;;  %p610_p11 = pnand %p609_p8, %p989_p9  ;;  %s614_s3 = scalar_lea.vmem %s613_s29, 256 }
  0x44   : > { %vm237_vm4 = vmand %vm232_vm0, %vm235_vm2  ;;  %v247_v35 = vld [vmem:[%s872_s4] sm:$0xff]  ;;  %v270_v44 = vld [vmem:[%s876_s5] sm:$0xff]  ;;  %p615_p7 = scmp.lt.s32.totalorder %s892_s15, %s613_s29  ;;  %p616_p13 = scmp.lt.s32.totalorder %s614_s3, %s608_s26 }
  0x45   : > { %v239_v8 = vsel %vm237_vm4, 0.0, %v203_v6  ;;  %v497_v10 = vsel %vm237_vm4, 1.0, %v725_v9  ;;  %vm238_vm5 = vmand %vm233_vm1, %vm236_vm3  ;;  %p611_p0 = pneg %p610_p11 }
  0x46   : > { %248 = vrot.lane.b32.xlu0 %v239_v8, %s726_s21  ;;  %v245_v11 = vadd.f32 %v497_v10, %v239_v8  ;;  %v240_v12 = vsel %vm238_vm5, 0.0, %v204_v7  ;;  %v498_v13 = vsel %vm238_vm5, 1.0, %v725_v9  ;;  %p617_p3 = por %p616_p13, %p615_p7 }
  0x47   : > { %v246_v14 = vadd.f32 %v498_v13, %v240_v12 }
  0x48   : > { %271 = vrot.lane.b32.xlu1 %v245_v11, %s726_s21  ;;  %p618_p6 = pnand %p617_p3, %p611_p0 }
  0x4a   : > { %250 = vrot.lane.b32.xlu0 %v240_v12, %s726_s21 }
  0x4c   : > { %273 = vrot.lane.b32.xlu1 %v246_v14, %s726_s21 }
  0xb8   : > { %v249_v17 = vpop.permute.xlu0 %248 }
  0xba   : > { %v272_v18 = vpop.permute.xlu1 %271 }
  0xbc   : > { %v251_v19 = vpop.permute.xlu0 %250 }
  0xbd   : > { %v253_v20 = vsel %vm252_vm7, %v249_v17, %v251_v19  ;;  %v254_v21 = vsel %vm252_vm7, %v251_v19, %v249_v17 }
  0xbe   : > { %v255_v22 = vmax.f32 %v239_v8, %v254_v21  ;;  %v256_v23 = vmax.f32 %v240_v12, %v253_v20  ;;  %v274_v24 = vpop.permute.xlu1 %273 }
  0xbf   : > { %v275_v25 = vsel %vm252_vm7, %v272_v18, %v274_v24  ;;  %v276_v26 = vsel %vm252_vm7, %v274_v24, %v272_v18 }
  0xc0   : > { %257 = vrot.lane.b32.xlu0 %v255_v22, %s729_s6  ;;  %259 = vrot.lane.b32.xlu1 %v256_v23, %s729_s6  ;;  %v277_v27 = vmin.f32 %v245_v11, %v276_v26  ;;  %v278_v28 = vmin.f32 %v246_v14, %v275_v25 }
  0xc4   : > { %279 = vrot.lane.b32.xlu0 %v277_v27, %s729_s6  ;;  %281 = vrot.lane.b32.xlu1 %v278_v28, %s729_s6 }
 0x132   : > { %v258_v29 = vpop.permute.xlu0 %257  ;;  %v260_v30 = vpop.permute.xlu1 %259 }
 0x133   : > { %v262_v31 = vsel %vm261_vm8, %v258_v29, %v260_v30  ;;  %v263_v32 = vsel %vm261_vm8, %v260_v30, %v258_v29 }
 0x134   : > { %v264_v33 = vmax.f32 %v255_v22, %v263_v32  ;;  %v265_v34 = vmax.f32 %v256_v23, %v262_v31 }
 0x136   : > { %v266_v36 = vmax.f32 %v264_v33, %v265_v34  ;;  %v280_v37 = vpop.permute.xlu0 %279  ;;  %v282_v38 = vpop.permute.xlu1 %281 }
 0x137   : > { %v283_v39 = vsel %vm261_vm8, %v280_v37, %v282_v38  ;;  %v284_v40 = vsel %vm261_vm8, %v282_v38, %v280_v37 }
 0x138   : > { %v267_v41 = vmax.f32 %v247_v35, %v266_v36  ;;  %v285_v42 = vmin.f32 %v277_v27, %v284_v40  ;;  %v286_v43 = vmin.f32 %v278_v28, %v283_v39 }
 0x13a   : > { %269 = vst.msk [vmem:[%s872_s4] sm:$0xff] %vm209_vm6, %v267_v41  ;;  %v287_v45 = vmin.f32 %v285_v42, %v286_v43 }
 0x13b   : > { %621 = shalt.err (!%p618_p6)
}
 0x13c   : > { %s622_s7 = scalar_lea.hbm %s890_s19, 128  ;;  %s626_s4 = scalar_lea.hbm %s979_s1, 256 }
 0x13d   : > { %p623_p4 = scmp.ne.s32.totalorder %s890_s19, %s622_s7  ;;  %p627_p1 = scmp.lt.u32.totalorder %s890_s19, %s979_s1 }
 0x13e   : > { %p628_p2 = scmp.lt.u32.totalorder %s626_s4, %s622_s7  ;;  %p630_p8 = scmp.lt.u32.totalorder %s622_s7, %s890_s19 }
 0x13f   : > { %p624_p10 = pnand %p623_p4, %p989_p9 }
 0x140   : > { %p629_p5 = por %p628_p2, %p627_p1 }
 0x141   : > { %p625_p12 = pneg %p624_p10 }
 0x142   : > { %p631_p11 = por %p630_p8, %p629_p5 }
 0x144   : > { %p632_p0 = pnand %p631_p11, %p625_p12 }
 0x146   : > { %635 = shalt.err (!%p632_p0)
}
 0x147   : > { %508 = dma.vmem_to_hbm [thread:$0]  (%p989_p9), %s892_s15, 128, %s890_s19, %s333_s25   ;;  %v288_v46 = vmin.f32 %v270_v44, %v287_v45 }
 0x148   : > { %s925_s27 = scalar_lea.hbm %s980_s2, %s501_s8  ;;  %s338_s29 = scalar_lea.sflag [#allocation7], %s858_s28 }
 0x149   : > { %289 = vst.msk [vmem:[%s876_s5] sm:$0xff] %vm209_vm6, %v288_v46  ;;  %s636_s3 = scalar_lea.vmem %s929_s20, 128  ;;  %s731_s12 = smov [#allocation6]  }
 0x14a   : > { %p637_p7 = scmp.ne.s32.totalorder %s929_s20, %s636_s3  ;;  %s640_s15 = sshll.u32 %s731_s12, 4  ;;  %s641_s15 = int_to_ptr.vmem [resolvable:$false] %s640_s15 }
 0x14b   : > { %s642_s19 = scalar_lea.vmem %s641_s15, 256  ;;  %p643_p6 = scmp.lt.s32.totalorder %s929_s20, %s641_s15 }
 0x14c   : > { %p638_p13 = pnand %p637_p7, %p989_p9  ;;  %p644_p4 = scmp.lt.s32.totalorder %s642_s19, %s636_s3 }
 0x14e   : > { %p639_p3 = pneg %p638_p13  ;;  %p645_p10 = por %p644_p4, %p643_p6 }
 0x150   : > { %p646_p12 = pnand %p645_p10, %p639_p3 }
 0x152   : > { %649 = shalt.err (!%p646_p12)
}
 0x153   : > { %s650_s28 = scalar_lea.hbm %s925_s27, 128  ;;  %s654_s25 = scalar_lea.hbm %s980_s2, 256 }
 0x154   : > { %p651_p1 = scmp.ne.s32.totalorder %s925_s27, %s650_s28  ;;  %p655_p8 = scmp.lt.u32.totalorder %s925_s27, %s980_s2 }
 0x155   : > { %p656_p11 = scmp.lt.u32.totalorder %s654_s25, %s650_s28  ;;  %p658_p7 = scmp.lt.u32.totalorder %s650_s28, %s925_s27 }
 0x156   : > { %p652_p2 = pnand %p651_p1, %p989_p9 }
 0x157   : > { %p657_p0 = por %p656_p11, %p655_p8 }
 0x158   : > { %p653_p5 = pneg %p652_p2 }
 0x159   : > { %p659_p13 = por %p658_p7, %p657_p0 }
 0x15b   : > { %p660_p3 = pnand %p659_p13, %p653_p5 }
 0x15d   : > { %663 = shalt.err (!%p660_p3)
}
 0x15e   : > { %509 = dma.vmem_to_hbm [thread:$0]  (%p989_p9), %s929_s20, 128, %s925_s27, %s338_s29  }
 0x15f PF: > { %s378_s30 = sand.u32 1, %s702_s9   ;;  %p990_p6 = scmp.ne.s32.totalorder %s985_s24, 0 }
 0x160   : > { %p991_p4 = scmp.ge.s32.totalorder %s722_s14, 2  ;;  %s379_s4 = scalar_lea.sflag [#allocation4], %s378_s30 }
 0x162   : > { %p517_p10 = pnand %p991_p4, %p990_p6 }
 0x164   : > { %693 = dma.done.wait (!%p517_p10), %s379_s4, 128  }
 0x165   : > { %695 = vsyncadd (!%p517_p10), %s379_s4, 4294967168  ;;  %s388_s6 = scalar_lea.sflag [#allocation7], %s378_s30 }
 0x166   : > { %697 = dma.done.wait (!%p517_p10), %s388_s6, 128  }
 0x167   : > { %699 = vsyncadd (!%p517_p10), %s388_s6, 4294967168  ;;  %s22_s14 = sadd.s32 1, %s722_s14   ;;  %s992_s9 = smov %s706_s10 }
 0x168   : > { %p19_p12 = scmp.ge.s32.totalorder %s22_s14, 4   ;;  %s993_s10 = smov %s710_s11 }
 0x169   : > { %s994_s11 = smov %s803_s23  ;;  %s995_s12 = smov %s718_s13 }
 0x16a   : > { %s996_s13 = smov %s998_s17  ;;  %21 = sbr.rel (!%p19_p12) target bundleno = 8 (0x8), region = 98 }
 0x171   :  { %393 = vsyncpa [#allocation3], 1 }
 0x172   :  { %395 = vsyncpa [#allocation3 + $0x1], 1 }
 0x173   :  { %396 = vsyncpa [#allocation4], 1 }
 0x174   :  { %398 = vsyncpa [#allocation4 + $0x1], 1 }
 0x175   :  { %399 = vsyncpa [#allocation7], 1 }
 0x176   :  { %401 = vsyncpa [#allocation7 + $0x1], 1 }

</bundles_post_ra>
